<compile_context>
chip_gen: v5e
topology: v5e:2x2
jax: 0.10.0
libtpu: 0.0.40
codegen_flags: <defaults>
</compile_context>

<pallas_src>
import numpy as np
import jax
import jax.numpy as jnp
from jax.experimental import pallas as pl
from jax.experimental.pallas import tpu as pltpu


def _plan_chunks(rows, cols, itemsize, *, max_chunks=4, min_chunk_bytes=1 << 20):
    """Static plan: (axis, [(start, size), ...]) contiguous chunks covering a
    (rows, cols) buffer.  axis == 0 -> row chunks, axis == 1 -> column chunks."""
    total_bytes = rows * cols * itemsize
    want = int(min(max_chunks, max(1, total_bytes // min_chunk_bytes)))
    if want <= 1:
        return 0, [(0, rows)]                       # single whole-buffer DMA
    if rows >= want:
        base, rem = divmod(rows, want)
        chunks, start = [], 0
        for i in range(want):
            size = base + (1 if i < rem else 0)
            if size:
                chunks.append((start, size))
                start += size
        return 0, chunks
    # Few rows but a huge flat axis: chunk columns, keeping boundaries
    # 128-aligned when the extent allows (layout-friendly DMA descriptors).
    bounds = []
    for i in range(1, want):
        b = (i * cols) // want
        if cols >= 128 * want:
            b = (b // 128) * 128
        bounds.append(b)
    edges = [0] + sorted({b for b in bounds if 0 < b < cols}) + [cols]
    chunks = [(edges[i], edges[i + 1] - edges[i]) for i in range(len(edges) - 1)]
    return 1, chunks


def _make_flatten_dma_kernel(axis, chunks, shape):
    """HBM->HBM copy: start every chunk DMA, then wait on all of them."""
    full = (len(chunks) == 1
            and chunks[0][0] == 0
            and chunks[0][1] == shape[axis])

    def kernel(x_ref, o_ref, sem):
        copies = []
        for idx, (start, size) in enumerate(chunks):
            if full:
                src, dst = x_ref, o_ref
            elif axis == 0:
                src = x_ref.at[pl.ds(start, size), :]
                dst = o_ref.at[pl.ds(start, size), :]
            else:
                src = x_ref.at[:, pl.ds(start, size)]
                dst = o_ref.at[:, pl.ds(start, size)]
            cp = pltpu.make_async_copy(src, dst, sem.at[idx])
            cp.start()
            copies.append(cp)
        for cp in copies:
            cp.wait()

    return kernel


def conv2linear(x):
    """Pallas implementation of Conv2Linear.forward: (N, ...) -> (N, prod(...))."""
    n = int(x.shape[0])
    flat = int(np.prod(x.shape[1:], dtype=np.int64))
    itemsize = np.dtype(x.dtype).itemsize
    total = n * flat

    if total == 0:
        # Degenerate size: nothing to copy.
        return jnp.reshape(x, (n, flat))

    # Metadata-only flatten; the Pallas kernel materializes the (n, flat) output.
    x2d = jnp.reshape(x, (n, flat))

    axis, chunks = _plan_chunks(n, flat, itemsize)
    kernel = _make_flatten_dma_kernel(axis, chunks, (n, flat))

    return pl.pallas_call(
        kernel,
        out_shape=jax.ShapeDtypeStruct((n, flat), x.dtype),
        in_specs=[pl.BlockSpec(memory_space=pl.ANY)],
        out_specs=pl.BlockSpec(memory_space=pl.ANY),
        scratch_shapes=[pltpu.SemaphoreType.DMA((len(chunks),))],
        cost_estimate=pl.CostEstimate(
            flops=0,
            transcendentals=0,
            bytes_accessed=2 * total * itemsize,
        ),
    )(x2d)


if __name__ == "__main__":
    key = jax.random.PRNGKey(0)
    # Shapes consistent with a conv feature map: N=2, C=4, H=16, W=16.
    x = jax.random.normal(key, (2, 4, 16, 16), dtype=jnp.float32)

    y = conv2linear(x)
    y = jax.block_until_ready(y)

    y_ref = np.asarray(x).reshape(x.shape[0], -1)
    assert y.shape == (2, 4 * 16 * 16), y.shape
    np.testing.assert_array_equal(np.asarray(y), y_ref)

    print("KERNEL_OK")
</pallas_src>

<mosaic_0001>
module attributes {stable_mosaic.version = 11 : i64} {
  func.func @kernel(%arg0: memref<2x1024xf32, #tpu.memory_space<any>>, %arg1: memref<2x1024xf32, #tpu.memory_space<any>>, %arg2: memref<1x!tpu.dma_semaphore, #tpu.memory_space<semaphore_mem>>) attributes {dimension_semantics = [], scalar_prefetch = 0 : i64, scratch_operands = 1 : i64, tpu.core_type = #tpu.core_type<tc>} {
    %c0_i32 = arith.constant 0 : i32
    %0 = tpu.memref_slice %arg2[%c0_i32] : memref<1x!tpu.dma_semaphore, #tpu.memory_space<semaphore_mem>> -> memref<1x!tpu.dma_semaphore, #tpu.memory_space<semaphore_mem>>
    %1 = tpu.memref_squeeze %0 : memref<1x!tpu.dma_semaphore, #tpu.memory_space<semaphore_mem>> -> memref<!tpu.dma_semaphore, #tpu.memory_space<semaphore_mem>>
    tpu.enqueue_dma source(%arg0 : memref<2x1024xf32, #tpu.memory_space<any>>) target(%arg1 : memref<2x1024xf32, #tpu.memory_space<any>>) target_semaphore(%1 : memref<!tpu.dma_semaphore, #tpu.memory_space<semaphore_mem>>)
    %c0_i32_0 = arith.constant 0 : i32
    %2 = tpu.memref_slice %arg2[%c0_i32_0] : memref<1x!tpu.dma_semaphore, #tpu.memory_space<semaphore_mem>> -> memref<1x!tpu.dma_semaphore, #tpu.memory_space<semaphore_mem>>
    %3 = tpu.memref_squeeze %2 : memref<1x!tpu.dma_semaphore, #tpu.memory_space<semaphore_mem>> -> memref<!tpu.dma_semaphore, #tpu.memory_space<semaphore_mem>>
    tpu.wait_dma2 semaphore(%3 : memref<!tpu.dma_semaphore, #tpu.memory_space<semaphore_mem>>) src(%arg0 : memref<2x1024xf32, #tpu.memory_space<any>>) dst(%arg1 : memref<2x1024xf32, #tpu.memory_space<any>>)
    return
  }
}

</mosaic_0001>

<bundles_post_ra>
// kernel: tpu_custom_call.1
= control target key start
LH: loop header
LB: loop body
LE: loop exit
PB: predicated region body
PF: predicated region fallthrough
CT: control target
= control target key end

     0   :  { %s33_s12 = smov [#allocation2]   ;;  %s34_s13 = smov [#allocation3]   ;;  %s52_s0 = inlined_call_operand.hbm [shape: f32[2,1024], index: 0, kind: input, shape index: {}]   ;;  %s53_s1 = inlined_call_operand.hbm [shape: f32[2,1024], index: 1, kind: output, shape index: {}]  }
   0x1   :  { %s10_s8 = sshll.u32 %s52_s0, 4  ;;  %s12_s11 = sshll.u32 %s53_s1, 4  ;;  %s11_s8 = int_to_ptr.hbm [resolvable:$true] %s10_s8  ;;  %s13_s11 = int_to_ptr.hbm [resolvable:$true] %s12_s11 }
   0x2   :  { %s35_s14 = smov 0  }
   0x3   :  { %16 = dma.general %s11_s8, 256, %s13_s11, %s33_s12, %s34_s13, [#allocation4], %s35_s14, 0  }
   0x4   :  { %31 = dma.done.wait [#allocation2], 256 }
   0x5   :  { %32 = vsyncadd [#allocation2], 4294967040 }
   0x6   :  { %21 = vsyncmov [#allocation2] }
   0x9   :  { %s22_s15 = vpop.sfrf %21 }
   0xa   :  { %p27_p0 = scmp.ne.s32.totalorder %s22_s15, 0 }
   0xc   :  { %26 = shalt.err (%p27_p0)  }

</bundles_post_ra>
